<compile_context>
chip_gen: v7x
topology: tpu7x:2x2x1
jax: 0.10.0
libtpu: 0.0.40
codegen_flags: <defaults>
</compile_context>

<pallas_src>
import math

import jax
import jax.numpy as jnp
from jax.experimental import pallas as pl
from jax.experimental.pallas import tpu as pltpu


LANE = 128  # lane-group width used for the (VMEM-only) hidden dimension


def _round_up(x, m):
    return ((x + m - 1) // m) * m


# ----------------------------------------------------------------------------
# Kernel: one fused 2-layer ReLU MLP on a (TB, INP) batch tile.
# ----------------------------------------------------------------------------
def _phi_critic_kernel(x_ref, wa_ref, ba_ref, wb_ref, bb_ref, out_ref):
    x = x_ref[...]

    # Layer 1 (both branches at once): (TB, INP) @ (INP, H2P) + (1, H2P)
    h = jnp.dot(x, wa_ref[...], preferred_element_type=jnp.float32) + ba_ref[...]
    h = jnp.maximum(h, 0.0)

    # Layer 2 (block-diagonal weight keeps the branches independent):
    # (TB, H2P) @ (H2P, 2*OUT) + (1, 2*OUT)
    y = jnp.dot(h.astype(wb_ref.dtype), wb_ref[...],
                preferred_element_type=jnp.float32) + bb_ref[...]
    out_ref[...] = jnp.maximum(y, 0.0).astype(out_ref.dtype)


# ----------------------------------------------------------------------------
# Batch-tile heuristic.
# ----------------------------------------------------------------------------
def _choose_batch_tile(B):
    """Rows per grid step.

    Small batches run as a single step (per-step overhead dominates otherwise).
    Large batches use an even number of <=2048-row steps so the "parallel" grid
    axis pipelines DMAs and splits evenly across both v7x TensorCores.
    """
    b8 = _round_up(B, 8)
    if b8 <= 1024:
        return b8
    n_steps = max(2, -(-b8 // 2048))
    if n_steps % 2:
        n_steps += 1
    return _round_up(-(-b8 // n_steps), 8)


# ----------------------------------------------------------------------------
# Wrapper: tile the batch, call the kernel, split the fused output.
# ----------------------------------------------------------------------------
def phi_critic_deepset(inp, fused, out_dim):
    """inp: (B, INP) float32. fused: dict from fuse_params(). Returns (out1, out2)."""
    B, inp_dim = inp.shape
    o2 = fused["w_b"].shape[1]  # == 2 * out_dim (no lane padding on the output)

    tb = _choose_batch_tile(B)
    b_p = _round_up(B, tb)

    x = inp.astype(fused["w_a"].dtype)
    if b_p != B:
        # Only the batch (sublane) dim is padded; padded rows are sliced off below.
        x = jnp.pad(x, ((0, b_p - B), (0, 0)))

    grid = (b_p // tb,)
    full = lambda arr: pl.BlockSpec(arr.shape, lambda i: (0, 0))

    out_pad = pl.pallas_call(
        _phi_critic_kernel,
        out_shape=jax.ShapeDtypeStruct((b_p, o2), jnp.float32),
        grid=grid,
        in_specs=[
            pl.BlockSpec((tb, inp_dim), lambda i: (i, 0)),  # input tile, real width
            full(fused["w_a"]),                             # fused layer-1 weight
            full(fused["b_a"]),                             # fused layer-1 bias
            full(fused["w_b"]),                             # block-diag layer-2 weight
            full(fused["b_b"]),                             # fused layer-2 bias
        ],
        out_specs=pl.BlockSpec((tb, o2), lambda i: (i, 0)),
        compiler_params=pltpu.CompilerParams(
            dimension_semantics=("parallel",)),
    )(x, fused["w_a"], fused["b_a"], fused["w_b"], fused["b_b"])

    out1 = out_pad[:B, :out_dim]
    out2 = out_pad[:B, out_dim:]
    return out1, out2


# ----------------------------------------------------------------------------
# Parameter init (matches PyTorch xavier_uniform_ weights, zero biases) and fusion.
# ----------------------------------------------------------------------------
def _xavier_uniform(key, fan_in, fan_out, gain=1.0):
    # Matches torch.nn.init.xavier_uniform_ (gain * sqrt(6 / (fan_in + fan_out))).
    limit = gain * math.sqrt(6.0 / (fan_in + fan_out))
    # Stored as (in, out) so the math is x @ W (== PyTorch x @ W.T with W (out, in)).
    return jax.random.uniform(key, (fan_in, fan_out), jnp.float32, -limit, limit)


def init_params(key, inp, hid, out):
    k1, k2, k4, k5 = jax.random.split(key, 4)
    return {
        "w1": _xavier_uniform(k1, inp, hid), "b1": jnp.zeros((hid,), jnp.float32),
        "w2": _xavier_uniform(k2, hid, out), "b2": jnp.zeros((out,), jnp.float32),
        "w4": _xavier_uniform(k4, inp, hid), "b4": jnp.zeros((hid,), jnp.float32),
        "w5": _xavier_uniform(k5, hid, out), "b5": jnp.zeros((out,), jnp.float32),
    }


def fuse_params(params, dtype=jnp.float32):
    """Fuse the two branches.

    Only the hidden dim (VMEM-only intermediate) is padded to a 128-lane multiple;
    the input and output dims keep their real widths to minimize HBM traffic.
    `dtype=jnp.bfloat16` halves weight traffic / speeds the v5e MXU (biases stay f32,
    accumulation stays f32 via preferred_element_type).
    """
    inp, hid = params["w1"].shape
    out = params["w2"].shape[1]
    h2p = _round_up(2 * hid, LANE)
    o2 = 2 * out

    # Layer 1: columns [0:hid] = branch 1, [hid:2*hid] = branch 2 (rest zero).
    w_a = jnp.zeros((inp, h2p), jnp.float32)
    w_a = w_a.at[:, :hid].set(params["w1"])
    w_a = w_a.at[:, hid:2 * hid].set(params["w4"])
    b_a = jnp.zeros((1, h2p), jnp.float32)
    b_a = b_a.at[0, :hid].set(params["b1"])
    b_a = b_a.at[0, hid:2 * hid].set(params["b4"])

    # Layer 2: block-diagonal so branch 1 only sees h[:, :hid], branch 2 only
    # h[:, hid:2*hid]; padded hidden rows are zero.
    w_b = jnp.zeros((h2p, o2), jnp.float32)
    w_b = w_b.at[:hid, :out].set(params["w2"])
    w_b = w_b.at[hid:2 * hid, out:].set(params["w5"])
    b_b = jnp.concatenate([params["b2"], params["b5"]]).reshape(1, o2)

    return {"w_a": w_a.astype(dtype), "b_a": b_a,
            "w_b": w_b.astype(dtype), "b_b": b_b}


if __name__ == "__main__":
    INP, HID, OUT = 16, 32, 8
    BATCH = 8

    key = jax.random.PRNGKey(0)
    k_params, k_inp = jax.random.split(key)
    params = init_params(k_params, INP, HID, OUT)
    fused = fuse_params(params)  # fp32 (pass dtype=jnp.bfloat16 for the low-precision path)
    x = jax.random.normal(k_inp, (BATCH, INP), jnp.float32)

    run = jax.jit(lambda x, f: phi_critic_deepset(x, f, OUT))
    out1, out2 = run(x, fused)
    jax.block_until_ready((out1, out2))

    # Reference check in plain JAX (unfused, same math as the PyTorch module).
    def ref(x, p):
        h1 = jnp.maximum(x @ p["w1"] + p["b1"], 0.0)
        y1 = jnp.maximum(h1 @ p["w2"] + p["b2"], 0.0)
        h2 = jnp.maximum(x @ p["w4"] + p["b4"], 0.0)
        y2 = jnp.maximum(h2 @ p["w5"] + p["b5"], 0.0)
        return y1, y2

    r1, r2 = ref(x, params)
    assert out1.shape == (BATCH, OUT) and out2.shape == (BATCH, OUT)
    assert jnp.allclose(out1, r1, atol=1e-5), "branch 1 mismatch"
    assert jnp.allclose(out2, r2, atol=1e-5), "branch 2 mismatch"

    print("KERNEL_OK")
</pallas_src>

<mosaic_0001>
module attributes {stable_mosaic.version = 11 : i64} {
  func.func @_phi_critic_kernel(%arg0: i32, %arg1: memref<8x16xf32, #tpu.memory_space<vmem>>, %arg2: memref<16x128xf32, #tpu.memory_space<vmem>>, %arg3: memref<1x128xf32, #tpu.memory_space<vmem>>, %arg4: memref<128x16xf32, #tpu.memory_space<vmem>>, %arg5: memref<1x16xf32, #tpu.memory_space<vmem>>, %arg6: memref<8x16xf32, #tpu.memory_space<vmem>>) attributes {dimension_semantics = [#tpu.dimension_semantics<parallel>], iteration_bounds = array<i64: 1>, scalar_prefetch = 0 : i64, scratch_operands = 0 : i64, tpu.core_type = #tpu.core_type<tc>, window_params = [{transform_indices = @transform_0, window_bounds = array<i64: 8, 16>}, {pipeline_mode = #tpu.pipeline_mode<synchronous>, transform_indices = @transform_1, window_bounds = array<i64: 16, 128>}, {pipeline_mode = #tpu.pipeline_mode<synchronous>, transform_indices = @transform_2, window_bounds = array<i64: 1, 128>}, {pipeline_mode = #tpu.pipeline_mode<synchronous>, transform_indices = @transform_3, window_bounds = array<i64: 128, 16>}, {pipeline_mode = #tpu.pipeline_mode<synchronous>, transform_indices = @transform_4, window_bounds = array<i64: 1, 16>}, {transform_indices = @transform_5, window_bounds = array<i64: 8, 16>}]} {
    %c0 = arith.constant 0 : index
    %c0_0 = arith.constant 0 : index
    %0 = vector.load %arg1[%c0, %c0_0] : memref<8x16xf32, #tpu.memory_space<vmem>>, vector<8x16xf32>
    %c0_1 = arith.constant 0 : index
    %c0_2 = arith.constant 0 : index
    %1 = vector.load %arg2[%c0_1, %c0_2] : memref<16x128xf32, #tpu.memory_space<vmem>>, vector<16x128xf32>
    %cst = arith.constant dense<0.000000e+00> : vector<8x128xf32>
    %2 = tpu.matmul %0, %1, %cst {dimension_numbers = #tpu.dot_dimension_numbers<[1], [0], [0], [1], [0, 0, 1, 1], [], []>} : vector<8x16xf32>, vector<16x128xf32>, vector<8x128xf32> -> vector<8x128xf32>
    %c0_3 = arith.constant 0 : index
    %c0_4 = arith.constant 0 : index
    %3 = vector.load %arg3[%c0_3, %c0_4] : memref<1x128xf32, #tpu.memory_space<vmem>>, vector<1x128xf32>
    %4 = vector.broadcast %3 : vector<1x128xf32> to vector<8x128xf32>
    %5 = arith.addf %2, %4 : vector<8x128xf32>
    %cst_5 = arith.constant 0.000000e+00 : f32
    %6 = vector.broadcast %cst_5 : f32 to vector<8x128xf32>
    %7 = arith.maximumf %5, %6 : vector<8x128xf32>
    %c0_6 = arith.constant 0 : index
    %c0_7 = arith.constant 0 : index
    %8 = vector.load %arg4[%c0_6, %c0_7] : memref<128x16xf32, #tpu.memory_space<vmem>>, vector<128x16xf32>
    %cst_8 = arith.constant dense<0.000000e+00> : vector<8x16xf32>
    %9 = tpu.matmul %7, %8, %cst_8 {dimension_numbers = #tpu.dot_dimension_numbers<[1], [0], [0], [1], [0, 0, 1, 1], [], []>} : vector<8x128xf32>, vector<128x16xf32>, vector<8x16xf32> -> vector<8x16xf32>
    %c0_9 = arith.constant 0 : index
    %c0_10 = arith.constant 0 : index
    %10 = vector.load %arg5[%c0_9, %c0_10] : memref<1x16xf32, #tpu.memory_space<vmem>>, vector<1x16xf32>
    %11 = vector.broadcast %10 : vector<1x16xf32> to vector<8x16xf32>
    %12 = arith.addf %9, %11 : vector<8x16xf32>
    %cst_11 = arith.constant 0.000000e+00 : f32
    %13 = vector.broadcast %cst_11 : f32 to vector<8x16xf32>
    %14 = arith.maximumf %12, %13 : vector<8x16xf32>
    %c0_12 = arith.constant 0 : index
    %c0_13 = arith.constant 0 : index
    %15 = vector.load %arg6[%c0_12, %c0_13] : memref<8x16xf32, #tpu.memory_space<vmem>>, vector<8x16xf32>
    tpu.vector_store %arg6[%c0_12, %c0_13], %14 {strides = array<i32>} : memref<8x16xf32, #tpu.memory_space<vmem>>, vector<8x16xf32>,
    return
  }
  func.func @transform_0(%arg0: i32) -> (i32, i32) {
    %c0_i32 = arith.constant 0 : i32
    %c0_i32_0 = arith.constant 0 : i32
    return %arg0, %c0_i32 : i32, i32
  }
  func.func @transform_1(%arg0: i32) -> (i32, i32) {
    %c0_i32 = arith.constant 0 : i32
    %c0_i32_0 = arith.constant 0 : i32
    %c0_i32_1 = arith.constant 0 : i32
    return %c0_i32, %c0_i32_0 : i32, i32
  }
  func.func @transform_2(%arg0: i32) -> (i32, i32) {
    %c0_i32 = arith.constant 0 : i32
    %c0_i32_0 = arith.constant 0 : i32
    %c0_i32_1 = arith.constant 0 : i32
    return %c0_i32, %c0_i32_0 : i32, i32
  }
  func.func @transform_3(%arg0: i32) -> (i32, i32) {
    %c0_i32 = arith.constant 0 : i32
    %c0_i32_0 = arith.constant 0 : i32
    %c0_i32_1 = arith.constant 0 : i32
    return %c0_i32, %c0_i32_0 : i32, i32
  }
  func.func @transform_4(%arg0: i32) -> (i32, i32) {
    %c0_i32 = arith.constant 0 : i32
    %c0_i32_0 = arith.constant 0 : i32
    %c0_i32_1 = arith.constant 0 : i32
    return %c0_i32, %c0_i32_0 : i32, i32
  }
  func.func @transform_5(%arg0: i32) -> (i32, i32) {
    %c0_i32 = arith.constant 0 : i32
    %c0_i32_0 = arith.constant 0 : i32
    return %arg0, %c0_i32 : i32, i32
  }
}

</mosaic_0001>

<bundles_post_ra>
// kernel: _lambda_.1
= control target key start
LH: loop header
LB: loop body
LE: loop exit
PB: predicated region body
PF: predicated region fallthrough
CT: control target
= control target key end

     0   :  { %v299_v0 = vmov 0.0|0.0   ;;  %vm300_vm0 = vmmov 0   ;;  %v301_v3 = vmov 0.0   ;;  %vm30_vm1 = vcmask 130048   ;;  %s400_s1 = inlined_call_operand.vmem [shape: f32[16,128], index: 1, kind: input, shape index: {}]   ;;  %s401_s3 = inlined_call_operand.vmem [shape: f32[128,16], index: 3, kind: input, shape index: {}]   ;;  %s402_s0 = inlined_call_operand.vmem [shape: f32[8,16], index: 0, kind: input, shape index: {}]   ;;  %s403_s2 = inlined_call_operand.vmem [shape: f32[1,128], index: 2, kind: input, shape index: {}]   ;;  %s404_s4 = inlined_call_operand.vmem [shape: f32[1,16], index: 4, kind: input, shape index: {}]   ;;  %s405_s5 = inlined_call_operand.vmem [shape: f32[8,16], index: 5, kind: output, shape index: {}]  }
   0x1   :  { %269 = vmatprep.subr.bf16.mxu0 %v299_v0  ;;  %v21_v1 = vld [vmem:[%s400_s1] sm:$0xff]  ;;  %v22_v2 = vld [vmem:[%s400_s1 + $0x8] sm:$0xff]  ;;  %231 = vmatprep.mubr.msk.f32.mxu0 %vm300_vm0, %v301_v3  ;;  %v107_v7 = vld [vmem:[%s401_s3 + $0x10] sm:$0xff] }
   0x2   :  { %v270_v4 = vpack.c.bf16 %v22_v2, %v21_v1  ;;  %272 = vmatprep.subr.bf16.mxu1 %v299_v0  ;;  %v105_v5 = vld [vmem:[%s401_s3] sm:$0xff]  ;;  %v106_v6 = vld [vmem:[%s401_s3 + $0x8] sm:$0xff]  ;;  %266 = vmatprep.mubr.msk.f32.mxu1 %vm300_vm0, %v301_v3  ;;  %v108_v9 = vld [vmem:[%s401_s3 + $0x18] sm:$0xff] }
   0x3   :  { %v273_v8 = vpack.c.bf16 %v106_v6, %v105_v5  ;;  %v20_v10 = vld [vmem:[%s402_s0] sm:$0xff]  ;;  %v276_v11 = vpack.c.bf16 %v108_v9, %v107_v7  ;;  %v110_v13 = vld [vmem:[%s401_s3 + $0x28] sm:$0xff]  ;;  %v111_v15 = vld [vmem:[%s401_s3 + $0x30] sm:$0xff] }
   0x4   :  { %271 = vmatpush3.bf16.msra.mxu0 %v270_v4  ;;  %v109_v12 = vld [vmem:[%s401_s3 + $0x20] sm:$0xff]  ;;  %v112_v16 = vld [vmem:[%s401_s3 + $0x38] sm:$0xff]  ;;  %v114_v19 = vld [vmem:[%s401_s3 + $0x48] sm:$0xff] }
   0x5   :  { %274 = vmatpush3.bf16.msra.mxu1 %v273_v8  ;;  %v279_v14 = vpack.c.bf16 %v110_v13, %v109_v12  ;;  %v282_v17 = vpack.c.bf16 %v112_v16, %v111_v15  ;;  %v113_v18 = vld [vmem:[%s401_s3 + $0x40] sm:$0xff]  ;;  %v115_v21 = vld [vmem:[%s401_s3 + $0x50] sm:$0xff]  ;;  %v116_v22 = vld [vmem:[%s401_s3 + $0x58] sm:$0xff] }
   0x6   :  { %275 = vmatprep.subr.bf16.mxu1 %v299_v0  ;;  %v285_v20 = vpack.c.bf16 %v114_v19, %v113_v18  ;;  %v288_v23 = vpack.c.bf16 %v116_v22, %v115_v21  ;;  %v117_v24 = vld [vmem:[%s401_s3 + $0x60] sm:$0xff]  ;;  %v118_v25 = vld [vmem:[%s401_s3 + $0x68] sm:$0xff]  ;;  %v119_v27 = vld [vmem:[%s401_s3 + $0x70] sm:$0xff] }
   0x7   :  { %232 = vmatmul.mubr.msk.f32.vlgmr.msra.gmra.mrb[0].mxu0 %vm30_vm1, %v20_v10  ;;  %v291_v26 = vpack.c.bf16 %v118_v25, %v117_v24  ;;  %v120_v28 = vld [vmem:[%s401_s3 + $0x78] sm:$0xff]  ;;  %v204_v30 = vld [vmem:[%s403_s2] ss:$0 sm:$0xff] }
   0x8   :  { %v294_v29 = vpack.c.bf16 %v120_v28, %v119_v27  ;;  %v206_v35 = vld [vmem:[%s404_s4] ss:$0 sm:$0xff] }
   0x9   :  { %277 = vmatpush3.bf16.msra.mxu1 %v276_v11 }
   0xa   :  { %278 = vmatprep.subr.bf16.mxu1 %v299_v0 }
   0xd   :  { %280 = vmatpush3.bf16.msra.mxu1 %v279_v14 }
   0xe   :  { %281 = vmatprep.subr.bf16.mxu1 %v299_v0 }
  0x11   :  { %283 = vmatpush3.bf16.msra.mxu1 %v282_v17 }
  0x12   :  { %284 = vmatprep.subr.bf16.mxu1 %v299_v0 }
  0x15   :  { %286 = vmatpush3.bf16.msra.mxu1 %v285_v20 }
  0x16   :  { %287 = vmatprep.subr.bf16.mxu1 %v299_v0 }
  0x19   :  { %289 = vmatpush3.bf16.msra.mxu1 %v288_v23 }
  0x1a   :  { %290 = vmatprep.subr.bf16.mxu1 %v299_v0 }
  0x1d   :  { %292 = vmatpush3.bf16.msra.mxu1 %v291_v26 }
  0x1e   :  { %293 = vmatprep.subr.bf16.mxu1 %v299_v0 }
  0x21   :  { %295 = vmatpush3.bf16.msra.mxu1 %v294_v29 }
  0xda   :  { %v100_v31 = vpop.f32.mrb[0].mxu0 }
  0xdb   :  { %v101_v32 = vadd.f32 %v204_v30, %v100_v31  ;;  %v233_v33 = vpop.f32.mrb[1].mxu0 }
  0xdd   :  { %v104_v34 = vmax.f32 %v101_v32, 0.0 }
  0xdf   :  { %267 = vmatmul.mubr.f32.vlgmr.msra.gmra.mrb[0].mxu1 %v104_v34 }
 0x1b2   :  { %v194_v36 = vpop.f32.mrb[0].mxu1 }
 0x1b3   :  { %v195_v37 = vadd.f32 %v206_v35, %v194_v36  ;;  %v268_v38 = vpop.f32.mrb[1].mxu1 }
 0x1b5   :  { %v198_v39 = vmax.f32 %v195_v37, 0.0 }
 0x1b7   :  { %199 = vst.msk [vmem:[%s405_s5] sm:$0xff] %vm30_vm1, %v198_v39 }

</bundles_post_ra>
